<compile_context>
chip_gen: v6e
topology: v6e:2x2x1
jax: 0.10.0
libtpu: 0.0.40
codegen_flags: <defaults>
</compile_context>

<pallas_src>
import numpy as np
import jax
import jax.numpy as jnp
from jax.experimental import pallas as pl
from jax.experimental.pallas import tpu as pltpu


def _is_v7x():
    """Best-effort chip-generation probe (v7x: 64 MiB VMEM, 2 TCs per chip)."""
    try:
        kind = jax.devices()[0].device_kind.lower()
    except Exception:
        return False
    return ("v7" in kind) or ("7x" in kind)


def _cutout_kernel(lh_ref, lwt_ref, x_ref, o_ref):
    # lh_ref : (Tn, S, H)      row-pooling matrices for this step's cutouts
    # lwt_ref: (Tn, W, S)      pre-transposed column-pooling matrices
    # x_ref  : (B*C*H, W)      whole image batch, VMEM-resident across the grid
    # o_ref  : (Tn, B*C, S, S) output blocks for this step's cutouts
    tn_blk, S, H = lh_ref.shape
    W = lwt_ref.shape[1]
    BC = x_ref.shape[0] // H

    x = x_ref[...]                                                   # (BC*H, W), hoisted
    for t in range(tn_blk):
        lwt = lwt_ref[t]                                             # (W, S)
        lh = lh_ref[t]                                               # (S, H)
        # Wide MXU matmul: contract W for every (b, c, h) row at once.
        u = jnp.dot(x, lwt, preferred_element_type=jnp.float32)      # (BC*H, S)
        u = u.astype(lh.dtype)
        for j in range(BC):
            # Static sublane-dim slice of a value (8-aligned when H % 8 == 0):
            # no lane crossing, no relayout copy.
            uj = u[j * H:(j + 1) * H, :]                             # (H, S)
            pj = jnp.dot(lh, uj, preferred_element_type=jnp.float32) # (S, S)
            # Full-block store at lane offset 0 (no misaligned partial stores).
            o_ref[t, j] = pj.astype(o_ref.dtype)


def make_cutouts_pallas(pixel_values, lh, lw, compute_dtype=jnp.bfloat16,
                        out_dtype=jnp.bfloat16, cutouts_per_step=4):
    """pixel_values: (B, C, H, W); lh: (N, S, H); lw: (N, S, W) (float32)."""
    B, C, H, W = pixel_values.shape
    N, S, _ = lh.shape
    BC = B * C

    is_v7 = _is_v7x()

    # Tn cutouts per grid step (amortizes per-step pipeline overhead, bigger DMAs).
    Tn = int(max(1, min(cutouts_per_step, N)))
    n_steps = -(-N // Tn)
    N_pad = Tn * n_steps
    if N_pad != N:
        pad = N_pad - N
        lh = jnp.concatenate([jnp.asarray(lh), jnp.zeros((pad, S, H), jnp.float32)], axis=0)
        lw = jnp.concatenate([jnp.asarray(lw), jnp.zeros((pad, S, W), jnp.float32)], axis=0)

    # Wrapper-side layout plumbing: pure reshape + cast, no transpose of the image.
    x_r = pixel_values.reshape(BC * H, W).astype(compute_dtype)       # (BC*H, W)
    lh_c = jnp.asarray(lh).astype(compute_dtype)                      # (N_pad, S, H)
    lwt = jnp.transpose(jnp.asarray(lw), (0, 2, 1)).astype(compute_dtype)  # (N_pad, W, S)

    # VMEM budget: resident x (single-buffered on v7x), double-buffered
    # lh/lwt/out blocks, plus compiler scratch headroom.
    dsz = jnp.dtype(compute_dtype).itemsize
    osz = jnp.dtype(out_dtype).itemsize
    x_bufs = 1 if is_v7 else 2
    est_vmem = (x_bufs * BC * H * W * dsz
                + 2 * Tn * S * H * dsz
                + 2 * Tn * W * S * dsz
                + 2 * Tn * BC * S * S * osz
                + (2 << 20))
    cap = (40 << 20) if is_v7 else (48 << 20)       # generation-aware cap
    vmem_limit = int(min(max(est_vmem, 4 << 20), cap))
    # NOTE: for very large B*C*H*W the resident image itself may exceed the cap;
    # that regime needs an extra outer BC-tiling grid axis (kept resident across
    # all cutouts). Not needed at these sizes.

    if is_v7:
        # Constant index_map -> image fetched once; double-buffering it is pure
        # VMEM waste on the 64-MiB chip.  CORE_PARALLEL actually engages both TCs.
        x_spec = pl.BlockSpec((BC * H, W), lambda n: (0, 0),
                              pipeline_mode=pl.Buffered(1))
        dim_sem = (pltpu.CORE_PARALLEL,)
    else:
        x_spec = pl.BlockSpec((BC * H, W), lambda n: (0, 0))
        dim_sem = (pltpu.PARALLEL,)

    flops = 2 * N_pad * BC * H * S * (W + S)
    bytes_accessed = int(BC * H * W * dsz + N_pad * S * H * dsz
                         + N_pad * W * S * dsz + N_pad * BC * S * S * osz)

    out = pl.pallas_call(
        _cutout_kernel,
        out_shape=jax.ShapeDtypeStruct((N_pad, BC, S, S), out_dtype),
        grid=(n_steps,),
        in_specs=[
            pl.BlockSpec((Tn, S, H), lambda n: (n, 0, 0)),
            pl.BlockSpec((Tn, W, S), lambda n: (n, 0, 0)),
            x_spec,                                   # constant -> fetched once
        ],
        out_specs=pl.BlockSpec((Tn, BC, S, S), lambda n: (n, 0, 0, 0)),
        compiler_params=pltpu.CompilerParams(
            dimension_semantics=dim_sem,
            vmem_limit_bytes=vmem_limit),
        cost_estimate=pl.CostEstimate(flops=flops, transcendentals=0,
                                      bytes_accessed=bytes_accessed),
    )(lh_c, lwt, x_r)

    # (N_pad, B*C, S, S) -> drop padding -> (N*B, C, S, S): cutout-major order,
    # matching torch.cat; pure reshape, no transpose.
    out = out[:N].reshape(N * B, C, S, S)
    return out.astype(pixel_values.dtype)


def _pool_matrix(side, offset, size, out_size):
    """Row i averages input pixels [offset+floor(i*size/S), offset+ceil((i+1)*size/S))."""
    L = np.zeros((out_size, side), dtype=np.float32)
    for i in range(out_size):
        start = (i * size) // out_size
        end = -((-(i + 1) * size) // out_size)   # ceil
        L[i, offset + start: offset + end] = 1.0 / float(end - start)
    return L


def make_cutouts(pixel_values, num_cutouts, cut_size, cut_power=1.0, seed=0,
                 compute_dtype=jnp.bfloat16):
    B, C, H, W = pixel_values.shape
    sideY, sideX = H, W
    max_size = min(sideX, sideY)
    min_size = min(sideX, sideY, cut_size)

    # Deterministic host-side "random" crop parameters (numpy RNG: no per-cutout
    # device syncs; torch's RNG stream is not reproduced, only its distribution).
    rng = np.random.default_rng(seed)
    lh_list, lw_list = [], []
    for _ in range(num_cutouts):
        r = float(rng.random())
        size = int((r ** cut_power) * (max_size - min_size) + min_size)
        size = max(size, 1)
        offsetx = int(rng.integers(0, sideX - size + 1))
        offsety = int(rng.integers(0, sideY - size + 1))
        lh_list.append(_pool_matrix(sideY, offsety, size, cut_size))
        lw_list.append(_pool_matrix(sideX, offsetx, size, cut_size))

    lh = np.stack(lh_list)   # (N, S, H) f32
    lw = np.stack(lw_list)   # (N, S, W) f32

    out = make_cutouts_pallas(pixel_values, jnp.asarray(lh), jnp.asarray(lw),
                              compute_dtype=compute_dtype)
    return out, lh, lw


def _reference(pixel_values, lh, lw):
    # Full-precision numpy reference of the same linear-pooling formulation:
    # out[n*B+b, c] = lh[n] @ x[b, c] @ lw[n].T
    x = np.asarray(pixel_values, dtype=np.float32)
    lh = np.asarray(lh, dtype=np.float32)
    lw = np.asarray(lw, dtype=np.float32)
    N, S, _ = lh.shape
    B, C, H, W = x.shape
    out = np.zeros((N * B, C, S, S), dtype=np.float32)
    for n in range(N):
        for b in range(B):
            for c in range(C):
                out[n * B + b, c] = lh[n] @ x[b, c] @ lw[n].T
    return out


if __name__ == "__main__":
    B, C, H, W = 2, 4, 16, 16
    cut_size = 8
    num_cutouts = 3

    key = jax.random.PRNGKey(0)
    pixel_values = jax.random.normal(key, (B, C, H, W), dtype=jnp.float32)

    out, lh, lw = make_cutouts(pixel_values, num_cutouts, cut_size,
                               cut_power=1.0, seed=0)
    out = jax.block_until_ready(out)

    assert out.shape == (num_cutouts * B, C, cut_size, cut_size), out.shape

    ref = _reference(pixel_values, lh, lw)
    # bf16 matmul inputs / bf16 output with f32 accumulation -> loose tolerance.
    np.testing.assert_allclose(np.asarray(out, dtype=np.float32), ref,
                               rtol=5e-2, atol=5e-2)

    print("KERNEL_OK")
</pallas_src>

<mosaic_0001>
module attributes {stable_mosaic.version = 11 : i64} {
  func.func @_cutout_kernel(%arg0: i32, %arg1: memref<3x8x16xbf16, #tpu.memory_space<vmem>>, %arg2: memref<3x16x8xbf16, #tpu.memory_space<vmem>>, %arg3: memref<128x16xbf16, #tpu.memory_space<vmem>>, %arg4: memref<3x8x8x8xbf16, #tpu.memory_space<vmem>>) attributes {dimension_semantics = [#tpu.dimension_semantics<parallel>], iteration_bounds = array<i64: 1>, scalar_prefetch = 0 : i64, scratch_operands = 0 : i64, tpu.core_type = #tpu.core_type<tc>, window_params = [{transform_indices = @transform_0, window_bounds = array<i64: 3, 8, 16>}, {transform_indices = @transform_1, window_bounds = array<i64: 3, 16, 8>}, {pipeline_mode = #tpu.pipeline_mode<synchronous>, transform_indices = @transform_2, window_bounds = array<i64: 128, 16>}, {transform_indices = @transform_3, window_bounds = array<i64: 3, 8, 8, 8>}]} {
    %c0 = arith.constant 0 : index
    %c0_0 = arith.constant 0 : index
    %0 = vector.load %arg3[%c0, %c0_0] : memref<128x16xbf16, #tpu.memory_space<vmem>>, vector<128x16xbf16>
    %c0_1 = arith.constant 0 : index
    %c0_2 = arith.constant 0 : index
    %c0_3 = arith.constant 0 : index
    %1 = vector.load %arg2[%c0_1, %c0_2, %c0_3] : memref<3x16x8xbf16, #tpu.memory_space<vmem>>, vector<1x16x8xbf16>
    %2 = vector.shape_cast %1 : vector<1x16x8xbf16> to vector<16x8xbf16>
    %c0_4 = arith.constant 0 : index
    %c0_5 = arith.constant 0 : index
    %c0_6 = arith.constant 0 : index
    %3 = vector.load %arg1[%c0_4, %c0_5, %c0_6] : memref<3x8x16xbf16, #tpu.memory_space<vmem>>, vector<1x8x16xbf16>
    %4 = vector.shape_cast %3 : vector<1x8x16xbf16> to vector<8x16xbf16>
    %cst = arith.constant dense<0.000000e+00> : vector<128x8xf32>
    %5 = tpu.matmul %0, %2, %cst {dimension_numbers = #tpu.dot_dimension_numbers<[1], [0], [0], [1], [0, 0, 1, 1], [], []>} : vector<128x16xbf16>, vector<16x8xbf16>, vector<128x8xf32> -> vector<128x8xf32>
    %6 = arith.truncf %5 : vector<128x8xf32> to vector<128x8xbf16>
    %7 = vector.extract_strided_slice %6 {offsets = [0, 0], sizes = [16, 8], strides = [1, 1]} : vector<128x8xbf16> to vector<16x8xbf16>
    %cst_7 = arith.constant dense<0.000000e+00> : vector<8x8xf32>
    %8 = tpu.matmul %4, %7, %cst_7 {dimension_numbers = #tpu.dot_dimension_numbers<[1], [0], [0], [1], [0, 0, 1, 1], [], []>} : vector<8x16xbf16>, vector<16x8xbf16>, vector<8x8xf32> -> vector<8x8xf32>
    %9 = arith.truncf %8 : vector<8x8xf32> to vector<8x8xbf16>
    %c0_8 = arith.constant 0 : index
    %c0_9 = arith.constant 0 : index
    %c0_10 = arith.constant 0 : index
    %c0_11 = arith.constant 0 : index
    %10 = vector.load %arg4[%c0_8, %c0_9, %c0_10, %c0_11] : memref<3x8x8x8xbf16, #tpu.memory_space<vmem>>, vector<1x1x8x8xbf16>
    %11 = vector.shape_cast %10 : vector<1x1x8x8xbf16> to vector<8x8xbf16>
    %12 = vector.shape_cast %9 : vector<8x8xbf16> to vector<1x1x8x8xbf16>
    tpu.vector_store %arg4[%c0_8, %c0_9, %c0_10, %c0_11], %12 {strides = array<i32>} : memref<3x8x8x8xbf16, #tpu.memory_space<vmem>>, vector<1x1x8x8xbf16>,
    %13 = vector.extract_strided_slice %6 {offsets = [16, 0], sizes = [16, 8], strides = [1, 1]} : vector<128x8xbf16> to vector<16x8xbf16>
    %cst_12 = arith.constant dense<0.000000e+00> : vector<8x8xf32>
    %14 = tpu.matmul %4, %13, %cst_12 {dimension_numbers = #tpu.dot_dimension_numbers<[1], [0], [0], [1], [0, 0, 1, 1], [], []>} : vector<8x16xbf16>, vector<16x8xbf16>, vector<8x8xf32> -> vector<8x8xf32>
    %15 = arith.truncf %14 : vector<8x8xf32> to vector<8x8xbf16>
    %c0_13 = arith.constant 0 : index
    %c1 = arith.constant 1 : index
    %c0_14 = arith.constant 0 : index
    %c0_15 = arith.constant 0 : index
    %16 = vector.load %arg4[%c0_13, %c1, %c0_14, %c0_15] : memref<3x8x8x8xbf16, #tpu.memory_space<vmem>>, vector<1x1x8x8xbf16>
    %17 = vector.shape_cast %16 : vector<1x1x8x8xbf16> to vector<8x8xbf16>
    %18 = vector.shape_cast %15 : vector<8x8xbf16> to vector<1x1x8x8xbf16>
    tpu.vector_store %arg4[%c0_13, %c1, %c0_14, %c0_15], %18 {strides = array<i32>} : memref<3x8x8x8xbf16, #tpu.memory_space<vmem>>, vector<1x1x8x8xbf16>,
    %19 = vector.extract_strided_slice %6 {offsets = [32, 0], sizes = [16, 8], strides = [1, 1]} : vector<128x8xbf16> to vector<16x8xbf16>
    %cst_16 = arith.constant dense<0.000000e+00> : vector<8x8xf32>
    %20 = tpu.matmul %4, %19, %cst_16 {dimension_numbers = #tpu.dot_dimension_numbers<[1], [0], [0], [1], [0, 0, 1, 1], [], []>} : vector<8x16xbf16>, vector<16x8xbf16>, vector<8x8xf32> -> vector<8x8xf32>
    %21 = arith.truncf %20 : vector<8x8xf32> to vector<8x8xbf16>
    %c0_17 = arith.constant 0 : index
    %c2 = arith.constant 2 : index
    %c0_18 = arith.constant 0 : index
    %c0_19 = arith.constant 0 : index
    %22 = vector.load %arg4[%c0_17, %c2, %c0_18, %c0_19] : memref<3x8x8x8xbf16, #tpu.memory_space<vmem>>, vector<1x1x8x8xbf16>
    %23 = vector.shape_cast %22 : vector<1x1x8x8xbf16> to vector<8x8xbf16>
    %24 = vector.shape_cast %21 : vector<8x8xbf16> to vector<1x1x8x8xbf16>
    tpu.vector_store %arg4[%c0_17, %c2, %c0_18, %c0_19], %24 {strides = array<i32>} : memref<3x8x8x8xbf16, #tpu.memory_space<vmem>>, vector<1x1x8x8xbf16>,
    %25 = vector.extract_strided_slice %6 {offsets = [48, 0], sizes = [16, 8], strides = [1, 1]} : vector<128x8xbf16> to vector<16x8xbf16>
    %cst_20 = arith.constant dense<0.000000e+00> : vector<8x8xf32>
    %26 = tpu.matmul %4, %25, %cst_20 {dimension_numbers = #tpu.dot_dimension_numbers<[1], [0], [0], [1], [0, 0, 1, 1], [], []>} : vector<8x16xbf16>, vector<16x8xbf16>, vector<8x8xf32> -> vector<8x8xf32>
    %27 = arith.truncf %26 : vector<8x8xf32> to vector<8x8xbf16>
    %c0_21 = arith.constant 0 : index
    %c3 = arith.constant 3 : index
    %c0_22 = arith.constant 0 : index
    %c0_23 = arith.constant 0 : index
    %28 = vector.load %arg4[%c0_21, %c3, %c0_22, %c0_23] : memref<3x8x8x8xbf16, #tpu.memory_space<vmem>>, vector<1x1x8x8xbf16>
    %29 = vector.shape_cast %28 : vector<1x1x8x8xbf16> to vector<8x8xbf16>
    %30 = vector.shape_cast %27 : vector<8x8xbf16> to vector<1x1x8x8xbf16>
    tpu.vector_store %arg4[%c0_21, %c3, %c0_22, %c0_23], %30 {strides = array<i32>} : memref<3x8x8x8xbf16, #tpu.memory_space<vmem>>, vector<1x1x8x8xbf16>,
    %31 = vector.extract_strided_slice %6 {offsets = [64, 0], sizes = [16, 8], strides = [1, 1]} : vector<128x8xbf16> to vector<16x8xbf16>
    %cst_24 = arith.constant dense<0.000000e+00> : vector<8x8xf32>
    %32 = tpu.matmul %4, %31, %cst_24 {dimension_numbers = #tpu.dot_dimension_numbers<[1], [0], [0], [1], [0, 0, 1, 1], [], []>} : vector<8x16xbf16>, vector<16x8xbf16>, vector<8x8xf32> -> vector<8x8xf32>
    %33 = arith.truncf %32 : vector<8x8xf32> to vector<8x8xbf16>
    %c0_25 = arith.constant 0 : index
    %c4 = arith.constant 4 : index
    %c0_26 = arith.constant 0 : index
    %c0_27 = arith.constant 0 : index
    %34 = vector.load %arg4[%c0_25, %c4, %c0_26, %c0_27] : memref<3x8x8x8xbf16, #tpu.memory_space<vmem>>, vector<1x1x8x8xbf16>
    %35 = vector.shape_cast %34 : vector<1x1x8x8xbf16> to vector<8x8xbf16>
    %36 = vector.shape_cast %33 : vector<8x8xbf16> to vector<1x1x8x8xbf16>
    tpu.vector_store %arg4[%c0_25, %c4, %c0_26, %c0_27], %36 {strides = array<i32>} : memref<3x8x8x8xbf16, #tpu.memory_space<vmem>>, vector<1x1x8x8xbf16>,
    %37 = vector.extract_strided_slice %6 {offsets = [80, 0], sizes = [16, 8], strides = [1, 1]} : vector<128x8xbf16> to vector<16x8xbf16>
    %cst_28 = arith.constant dense<0.000000e+00> : vector<8x8xf32>
    %38 = tpu.matmul %4, %37, %cst_28 {dimension_numbers = #tpu.dot_dimension_numbers<[1], [0], [0], [1], [0, 0, 1, 1], [], []>} : vector<8x16xbf16>, vector<16x8xbf16>, vector<8x8xf32> -> vector<8x8xf32>
    %39 = arith.truncf %38 : vector<8x8xf32> to vector<8x8xbf16>
    %c0_29 = arith.constant 0 : index
    %c5 = arith.constant 5 : index
    %c0_30 = arith.constant 0 : index
    %c0_31 = arith.constant 0 : index
    %40 = vector.load %arg4[%c0_29, %c5, %c0_30, %c0_31] : memref<3x8x8x8xbf16, #tpu.memory_space<vmem>>, vector<1x1x8x8xbf16>
    %41 = vector.shape_cast %40 : vector<1x1x8x8xbf16> to vector<8x8xbf16>
    %42 = vector.shape_cast %39 : vector<8x8xbf16> to vector<1x1x8x8xbf16>
    tpu.vector_store %arg4[%c0_29, %c5, %c0_30, %c0_31], %42 {strides = array<i32>} : memref<3x8x8x8xbf16, #tpu.memory_space<vmem>>, vector<1x1x8x8xbf16>,
    %43 = vector.extract_strided_slice %6 {offsets = [96, 0], sizes = [16, 8], strides = [1, 1]} : vector<128x8xbf16> to vector<16x8xbf16>
    %cst_32 = arith.constant dense<0.000000e+00> : vector<8x8xf32>
    %44 = tpu.matmul %4, %43, %cst_32 {dimension_numbers = #tpu.dot_dimension_numbers<[1], [0], [0], [1], [0, 0, 1, 1], [], []>} : vector<8x16xbf16>, vector<16x8xbf16>, vector<8x8xf32> -> vector<8x8xf32>
    %45 = arith.truncf %44 : vector<8x8xf32> to vector<8x8xbf16>
    %c0_33 = arith.constant 0 : index
    %c6 = arith.constant 6 : index
    %c0_34 = arith.constant 0 : index
    %c0_35 = arith.constant 0 : index
    %46 = vector.load %arg4[%c0_33, %c6, %c0_34, %c0_35] : memref<3x8x8x8xbf16, #tpu.memory_space<vmem>>, vector<1x1x8x8xbf16>
    %47 = vector.shape_cast %46 : vector<1x1x8x8xbf16> to vector<8x8xbf16>
    %48 = vector.shape_cast %45 : vector<8x8xbf16> to vector<1x1x8x8xbf16>
    tpu.vector_store %arg4[%c0_33, %c6, %c0_34, %c0_35], %48 {strides = array<i32>} : memref<3x8x8x8xbf16, #tpu.memory_space<vmem>>, vector<1x1x8x8xbf16>,
    %49 = vector.extract_strided_slice %6 {offsets = [112, 0], sizes = [16, 8], strides = [1, 1]} : vector<128x8xbf16> to vector<16x8xbf16>
    %cst_36 = arith.constant dense<0.000000e+00> : vector<8x8xf32>
    %50 = tpu.matmul %4, %49, %cst_36 {dimension_numbers = #tpu.dot_dimension_numbers<[1], [0], [0], [1], [0, 0, 1, 1], [], []>} : vector<8x16xbf16>, vector<16x8xbf16>, vector<8x8xf32> -> vector<8x8xf32>
    %51 = arith.truncf %50 : vector<8x8xf32> to vector<8x8xbf16>
    %c0_37 = arith.constant 0 : index
    %c7 = arith.constant 7 : index
    %c0_38 = arith.constant 0 : index
    %c0_39 = arith.constant 0 : index
    %52 = vector.load %arg4[%c0_37, %c7, %c0_38, %c0_39] : memref<3x8x8x8xbf16, #tpu.memory_space<vmem>>, vector<1x1x8x8xbf16>
    %53 = vector.shape_cast %52 : vector<1x1x8x8xbf16> to vector<8x8xbf16>
    %54 = vector.shape_cast %51 : vector<8x8xbf16> to vector<1x1x8x8xbf16>
    tpu.vector_store %arg4[%c0_37, %c7, %c0_38, %c0_39], %54 {strides = array<i32>} : memref<3x8x8x8xbf16, #tpu.memory_space<vmem>>, vector<1x1x8x8xbf16>,
    %c1_40 = arith.constant 1 : index
    %c0_41 = arith.constant 0 : index
    %c0_42 = arith.constant 0 : index
    %55 = vector.load %arg2[%c1_40, %c0_41, %c0_42] : memref<3x16x8xbf16, #tpu.memory_space<vmem>>, vector<1x16x8xbf16>
    %56 = vector.shape_cast %55 : vector<1x16x8xbf16> to vector<16x8xbf16>
    %c1_43 = arith.constant 1 : index
    %c0_44 = arith.constant 0 : index
    %c0_45 = arith.constant 0 : index
    %57 = vector.load %arg1[%c1_43, %c0_44, %c0_45] : memref<3x8x16xbf16, #tpu.memory_space<vmem>>, vector<1x8x16xbf16>
    %58 = vector.shape_cast %57 : vector<1x8x16xbf16> to vector<8x16xbf16>
    %cst_46 = arith.constant dense<0.000000e+00> : vector<128x8xf32>
    %59 = tpu.matmul %0, %56, %cst_46 {dimension_numbers = #tpu.dot_dimension_numbers<[1], [0], [0], [1], [0, 0, 1, 1], [], []>} : vector<128x16xbf16>, vector<16x8xbf16>, vector<128x8xf32> -> vector<128x8xf32>
    %60 = arith.truncf %59 : vector<128x8xf32> to vector<128x8xbf16>
    %61 = vector.extract_strided_slice %60 {offsets = [0, 0], sizes = [16, 8], strides = [1, 1]} : vector<128x8xbf16> to vector<16x8xbf16>
    %cst_47 = arith.constant dense<0.000000e+00> : vector<8x8xf32>
    %62 = tpu.matmul %58, %61, %cst_47 {dimension_numbers = #tpu.dot_dimension_numbers<[1], [0], [0], [1], [0, 0, 1, 1], [], []>} : vector<8x16xbf16>, vector<16x8xbf16>, vector<8x8xf32> -> vector<8x8xf32>
    %63 = arith.truncf %62 : vector<8x8xf32> to vector<8x8xbf16>
    %c1_48 = arith.constant 1 : index
    %c0_49 = arith.constant 0 : index
    %c0_50 = arith.constant 0 : index
    %c0_51 = arith.constant 0 : index
    %64 = vector.load %arg4[%c1_48, %c0_49, %c0_50, %c0_51] : memref<3x8x8x8xbf16, #tpu.memory_space<vmem>>, vector<1x1x8x8xbf16>
    %65 = vector.shape_cast %64 : vector<1x1x8x8xbf16> to vector<8x8xbf16>
    %66 = vector.shape_cast %63 : vector<8x8xbf16> to vector<1x1x8x8xbf16>
    tpu.vector_store %arg4[%c1_48, %c0_49, %c0_50, %c0_51], %66 {strides = array<i32>} : memref<3x8x8x8xbf16, #tpu.memory_space<vmem>>, vector<1x1x8x8xbf16>,
    %67 = vector.extract_strided_slice %60 {offsets = [16, 0], sizes = [16, 8], strides = [1, 1]} : vector<128x8xbf16> to vector<16x8xbf16>
    %cst_52 = arith.constant dense<0.000000e+00> : vector<8x8xf32>
    %68 = tpu.matmul %58, %67, %cst_52 {dimension_numbers = #tpu.dot_dimension_numbers<[1], [0], [0], [1], [0, 0, 1, 1], [], []>} : vector<8x16xbf16>, vector<16x8xbf16>, vector<8x8xf32> -> vector<8x8xf32>
    %69 = arith.truncf %68 : vector<8x8xf32> to vector<8x8xbf16>
    %c1_53 = arith.constant 1 : index
    %c1_54 = arith.constant 1 : index
    %c0_55 = arith.constant 0 : index
    %c0_56 = arith.constant 0 : index
    %70 = vector.load %arg4[%c1_53, %c1_54, %c0_55, %c0_56] : memref<3x8x8x8xbf16, #tpu.memory_space<vmem>>, vector<1x1x8x8xbf16>
    %71 = vector.shape_cast %70 : vector<1x1x8x8xbf16> to vector<8x8xbf16>
    %72 = vector.shape_cast %69 : vector<8x8xbf16> to vector<1x1x8x8xbf16>
    tpu.vector_store %arg4[%c1_53, %c1_54, %c0_55, %c0_56], %72 {strides = array<i32>} : memref<3x8x8x8xbf16, #tpu.memory_space<vmem>>, vector<1x1x8x8xbf16>,
    %73 = vector.extract_strided_slice %60 {offsets = [32, 0], sizes = [16, 8], strides = [1, 1]} : vector<128x8xbf16> to vector<16x8xbf16>
    %cst_57 = arith.constant dense<0.000000e+00> : vector<8x8xf32>
    %74 = tpu.matmul %58, %73, %cst_57 {dimension_numbers = #tpu.dot_dimension_numbers<[1], [0], [0], [1], [0, 0, 1, 1], [], []>} : vector<8x16xbf16>, vector<16x8xbf16>, vector<8x8xf32> -> vector<8x8xf32>
    %75 = arith.truncf %74 : vector<8x8xf32> to vector<8x8xbf16>
    %c1_58 = arith.constant 1 : index
    %c2_59 = arith.constant 2 : index
    %c0_60 = arith.constant 0 : index
    %c0_61 = arith.constant 0 : index
    %76 = vector.load %arg4[%c1_58, %c2_59, %c0_60, %c0_61] : memref<3x8x8x8xbf16, #tpu.memory_space<vmem>>, vector<1x1x8x8xbf16>
    %77 = vector.shape_cast %76 : vector<1x1x8x8xbf16> to vector<8x8xbf16>
    %78 = vector.shape_cast %75 : vector<8x8xbf16> to vector<1x1x8x8xbf16>
    tpu.vector_store %arg4[%c1_58, %c2_59, %c0_60, %c0_61], %78 {strides = array<i32>} : memref<3x8x8x8xbf16, #tpu.memory_space<vmem>>, vector<1x1x8x8xbf16>,
    %79 = vector.extract_strided_slice %60 {offsets = [48, 0], sizes = [16, 8], strides = [1, 1]} : vector<128x8xbf16> to vector<16x8xbf16>
    %cst_62 = arith.constant dense<0.000000e+00> : vector<8x8xf32>
    %80 = tpu.matmul %58, %79, %cst_62 {dimension_numbers = #tpu.dot_dimension_numbers<[1], [0], [0], [1], [0, 0, 1, 1], [], []>} : vector<8x16xbf16>, vector<16x8xbf16>, vector<8x8xf32> -> vector<8x8xf32>
    %81 = arith.truncf %80 : vector<8x8xf32> to vector<8x8xbf16>
    %c1_63 = arith.constant 1 : index
    %c3_64 = arith.constant 3 : index
    %c0_65 = arith.constant 0 : index
    %c0_66 = arith.constant 0 : index
    %82 = vector.load %arg4[%c1_63, %c3_64, %c0_65, %c0_66] : memref<3x8x8x8xbf16, #tpu.memory_space<vmem>>, vector<1x1x8x8xbf16>
    %83 = vector.shape_cast %82 : vector<1x1x8x8xbf16> to vector<8x8xbf16>
    %84 = vector.shape_cast %81 : vector<8x8xbf16> to vector<1x1x8x8xbf16>
    tpu.vector_store %arg4[%c1_63, %c3_64, %c0_65, %c0_66], %84 {strides = array<i32>} : memref<3x8x8x8xbf16, #tpu.memory_space<vmem>>, vector<1x1x8x8xbf16>,
    %85 = vector.extract_strided_slice %60 {offsets = [64, 0], sizes = [16, 8], strides = [1, 1]} : vector<128x8xbf16> to vector<16x8xbf16>
    %cst_67 = arith.constant dense<0.000000e+00> : vector<8x8xf32>
    %86 = tpu.matmul %58, %85, %cst_67 {dimension_numbers = #tpu.dot_dimension_numbers<[1], [0], [0], [1], [0, 0, 1, 1], [], []>} : vector<8x16xbf16>, vector<16x8xbf16>, vector<8x8xf32> -> vector<8x8xf32>
    %87 = arith.truncf %86 : vector<8x8xf32> to vector<8x8xbf16>
    %c1_68 = arith.constant 1 : index
    %c4_69 = arith.constant 4 : index
    %c0_70 = arith.constant 0 : index
    %c0_71 = arith.constant 0 : index
    %88 = vector.load %arg4[%c1_68, %c4_69, %c0_70, %c0_71] : memref<3x8x8x8xbf16, #tpu.memory_space<vmem>>, vector<1x1x8x8xbf16>
    %89 = vector.shape_cast %88 : vector<1x1x8x8xbf16> to vector<8x8xbf16>
    %90 = vector.shape_cast %87 : vector<8x8xbf16> to vector<1x1x8x8xbf16>
    tpu.vector_store %arg4[%c1_68, %c4_69, %c0_70, %c0_71], %90 {strides = array<i32>} : memref<3x8x8x8xbf16, #tpu.memory_space<vmem>>, vector<1x1x8x8xbf16>,
    %91 = vector.extract_strided_slice %60 {offsets = [80, 0], sizes = [16, 8], strides = [1, 1]} : vector<128x8xbf16> to vector<16x8xbf16>
    %cst_72 = arith.constant dense<0.000000e+00> : vector<8x8xf32>
    %92 = tpu.matmul %58, %91, %cst_72 {dimension_numbers = #tpu.dot_dimension_numbers<[1], [0], [0], [1], [0, 0, 1, 1], [], []>} : vector<8x16xbf16>, vector<16x8xbf16>, vector<8x8xf32> -> vector<8x8xf32>
    %93 = arith.truncf %92 : vector<8x8xf32> to vector<8x8xbf16>
    %c1_73 = arith.constant 1 : index
    %c5_74 = arith.constant 5 : index
    %c0_75 = arith.constant 0 : index
    %c0_76 = arith.constant 0 : index
    %94 = vector.load %arg4[%c1_73, %c5_74, %c0_75, %c0_76] : memref<3x8x8x8xbf16, #tpu.memory_space<vmem>>, vector<1x1x8x8xbf16>
    %95 = vector.shape_cast %94 : vector<1x1x8x8xbf16> to vector<8x8xbf16>
    %96 = vector.shape_cast %93 : vector<8x8xbf16> to vector<1x1x8x8xbf16>
    tpu.vector_store %arg4[%c1_73, %c5_74, %c0_75, %c0_76], %96 {strides = array<i32>} : memref<3x8x8x8xbf16, #tpu.memory_space<vmem>>, vector<1x1x8x8xbf16>,
    %97 = vector.extract_strided_slice %60 {offsets = [96, 0], sizes = [16, 8], strides = [1, 1]} : vector<128x8xbf16> to vector<16x8xbf16>
    %cst_77 = arith.constant dense<0.000000e+00> : vector<8x8xf32>
    %98 = tpu.matmul %58, %97, %cst_77 {dimension_numbers = #tpu.dot_dimension_numbers<[1], [0], [0], [1], [0, 0, 1, 1], [], []>} : vector<8x16xbf16>, vector<16x8xbf16>, vector<8x8xf32> -> vector<8x8xf32>
    %99 = arith.truncf %98 : vector<8x8xf32> to vector<8x8xbf16>
    %c1_78 = arith.constant 1 : index
    %c6_79 = arith.constant 6 : index
    %c0_80 = arith.constant 0 : index
    %c0_81 = arith.constant 0 : index
    %100 = vector.load %arg4[%c1_78, %c6_79, %c0_80, %c0_81] : memref<3x8x8x8xbf16, #tpu.memory_space<vmem>>, vector<1x1x8x8xbf16>
    %101 = vector.shape_cast %100 : vector<1x1x8x8xbf16> to vector<8x8xbf16>
    %102 = vector.shape_cast %99 : vector<8x8xbf16> to vector<1x1x8x8xbf16>
    tpu.vector_store %arg4[%c1_78, %c6_79, %c0_80, %c0_81], %102 {strides = array<i32>} : memref<3x8x8x8xbf16, #tpu.memory_space<vmem>>, vector<1x1x8x8xbf16>,
    %103 = vector.extract_strided_slice %60 {offsets = [112, 0], sizes = [16, 8], strides = [1, 1]} : vector<128x8xbf16> to vector<16x8xbf16>
    %cst_82 = arith.constant dense<0.000000e+00> : vector<8x8xf32>
    %104 = tpu.matmul %58, %103, %cst_82 {dimension_numbers = #tpu.dot_dimension_numbers<[1], [0], [0], [1], [0, 0, 1, 1], [], []>} : vector<8x16xbf16>, vector<16x8xbf16>, vector<8x8xf32> -> vector<8x8xf32>
    %105 = arith.truncf %104 : vector<8x8xf32> to vector<8x8xbf16>
    %c1_83 = arith.constant 1 : index
    %c7_84 = arith.constant 7 : index
    %c0_85 = arith.constant 0 : index
    %c0_86 = arith.constant 0 : index
    %106 = vector.load %arg4[%c1_83, %c7_84, %c0_85, %c0_86] : memref<3x8x8x8xbf16, #tpu.memory_space<vmem>>, vector<1x1x8x8xbf16>
    %107 = vector.shape_cast %106 : vector<1x1x8x8xbf16> to vector<8x8xbf16>
    %108 = vector.shape_cast %105 : vector<8x8xbf16> to vector<1x1x8x8xbf16>
    tpu.vector_store %arg4[%c1_83, %c7_84, %c0_85, %c0_86], %108 {strides = array<i32>} : memref<3x8x8x8xbf16, #tpu.memory_space<vmem>>, vector<1x1x8x8xbf16>,
    %c2_87 = arith.constant 2 : index
    %c0_88 = arith.constant 0 : index
    %c0_89 = arith.constant 0 : index
    %109 = vector.load %arg2[%c2_87, %c0_88, %c0_89] : memref<3x16x8xbf16, #tpu.memory_space<vmem>>, vector<1x16x8xbf16>
    %110 = vector.shape_cast %109 : vector<1x16x8xbf16> to vector<16x8xbf16>
    %c2_90 = arith.constant 2 : index
    %c0_91 = arith.constant 0 : index
    %c0_92 = arith.constant 0 : index
    %111 = vector.load %arg1[%c2_90, %c0_91, %c0_92] : memref<3x8x16xbf16, #tpu.memory_space<vmem>>, vector<1x8x16xbf16>
    %112 = vector.shape_cast %111 : vector<1x8x16xbf16> to vector<8x16xbf16>
    %cst_93 = arith.constant dense<0.000000e+00> : vector<128x8xf32>
    %113 = tpu.matmul %0, %110, %cst_93 {dimension_numbers = #tpu.dot_dimension_numbers<[1], [0], [0], [1], [0, 0, 1, 1], [], []>} : vector<128x16xbf16>, vector<16x8xbf16>, vector<128x8xf32> -> vector<128x8xf32>
    %114 = arith.truncf %113 : vector<128x8xf32> to vector<128x8xbf16>
    %115 = vector.extract_strided_slice %114 {offsets = [0, 0], sizes = [16, 8], strides = [1, 1]} : vector<128x8xbf16> to vector<16x8xbf16>
    %cst_94 = arith.constant dense<0.000000e+00> : vector<8x8xf32>
    %116 = tpu.matmul %112, %115, %cst_94 {dimension_numbers = #tpu.dot_dimension_numbers<[1], [0], [0], [1], [0, 0, 1, 1], [], []>} : vector<8x16xbf16>, vector<16x8xbf16>, vector<8x8xf32> -> vector<8x8xf32>
    %117 = arith.truncf %116 : vector<8x8xf32> to vector<8x8xbf16>
    %c2_95 = arith.constant 2 : index
    %c0_96 = arith.constant 0 : index
    %c0_97 = arith.constant 0 : index
    %c0_98 = arith.constant 0 : index
    %118 = vector.load %arg4[%c2_95, %c0_96, %c0_97, %c0_98] : memref<3x8x8x8xbf16, #tpu.memory_space<vmem>>, vector<1x1x8x8xbf16>
    %119 = vector.shape_cast %118 : vector<1x1x8x8xbf16> to vector<8x8xbf16>
    %120 = vector.shape_cast %117 : vector<8x8xbf16> to vector<1x1x8x8xbf16>
    tpu.vector_store %arg4[%c2_95, %c0_96, %c0_97, %c0_98], %120 {strides = array<i32>} : memref<3x8x8x8xbf16, #tpu.memory_space<vmem>>, vector<1x1x8x8xbf16>,
    %121 = vector.extract_strided_slice %114 {offsets = [16, 0], sizes = [16, 8], strides = [1, 1]} : vector<128x8xbf16> to vector<16x8xbf16>
    %cst_99 = arith.constant dense<0.000000e+00> : vector<8x8xf32>
    %122 = tpu.matmul %112, %121, %cst_99 {dimension_numbers = #tpu.dot_dimension_numbers<[1], [0], [0], [1], [0, 0, 1, 1], [], []>} : vector<8x16xbf16>, vector<16x8xbf16>, vector<8x8xf32> -> vector<8x8xf32>
    %123 = arith.truncf %122 : vector<8x8xf32> to vector<8x8xbf16>
    %c2_100 = arith.constant 2 : index
    %c1_101 = arith.constant 1 : index
    %c0_102 = arith.constant 0 : index
    %c0_103 = arith.constant 0 : index
    %124 = vector.load %arg4[%c2_100, %c1_101, %c0_102, %c0_103] : memref<3x8x8x8xbf16, #tpu.memory_space<vmem>>, vector<1x1x8x8xbf16>
    %125 = vector.shape_cast %124 : vector<1x1x8x8xbf16> to vector<8x8xbf16>
    %126 = vector.shape_cast %123 : vector<8x8xbf16> to vector<1x1x8x8xbf16>
    tpu.vector_store %arg4[%c2_100, %c1_101, %c0_102, %c0_103], %126 {strides = array<i32>} : memref<3x8x8x8xbf16, #tpu.memory_space<vmem>>, vector<1x1x8x8xbf16>,
    %127 = vector.extract_strided_slice %114 {offsets = [32, 0], sizes = [16, 8], strides = [1, 1]} : vector<128x8xbf16> to vector<16x8xbf16>
    %cst_104 = arith.constant dense<0.000000e+00> : vector<8x8xf32>
    %128 = tpu.matmul %112, %127, %cst_104 {dimension_numbers = #tpu.dot_dimension_numbers<[1], [0], [0], [1], [0, 0, 1, 1], [], []>} : vector<8x16xbf16>, vector<16x8xbf16>, vector<8x8xf32> -> vector<8x8xf32>
    %129 = arith.truncf %128 : vector<8x8xf32> to vector<8x8xbf16>
    %c2_105 = arith.constant 2 : index
    %c2_106 = arith.constant 2 : index
    %c0_107 = arith.constant 0 : index
    %c0_108 = arith.constant 0 : index
    %130 = vector.load %arg4[%c2_105, %c2_106, %c0_107, %c0_108] : memref<3x8x8x8xbf16, #tpu.memory_space<vmem>>, vector<1x1x8x8xbf16>
    %131 = vector.shape_cast %130 : vector<1x1x8x8xbf16> to vector<8x8xbf16>
    %132 = vector.shape_cast %129 : vector<8x8xbf16> to vector<1x1x8x8xbf16>
    tpu.vector_store %arg4[%c2_105, %c2_106, %c0_107, %c0_108], %132 {strides = array<i32>} : memref<3x8x8x8xbf16, #tpu.memory_space<vmem>>, vector<1x1x8x8xbf16>,
    %133 = vector.extract_strided_slice %114 {offsets = [48, 0], sizes = [16, 8], strides = [1, 1]} : vector<128x8xbf16> to vector<16x8xbf16>
    %cst_109 = arith.constant dense<0.000000e+00> : vector<8x8xf32>
    %134 = tpu.matmul %112, %133, %cst_109 {dimension_numbers = #tpu.dot_dimension_numbers<[1], [0], [0], [1], [0, 0, 1, 1], [], []>} : vector<8x16xbf16>, vector<16x8xbf16>, vector<8x8xf32> -> vector<8x8xf32>
    %135 = arith.truncf %134 : vector<8x8xf32> to vector<8x8xbf16>
    %c2_110 = arith.constant 2 : index
    %c3_111 = arith.constant 3 : index
    %c0_112 = arith.constant 0 : index
    %c0_113 = arith.constant 0 : index
    %136 = vector.load %arg4[%c2_110, %c3_111, %c0_112, %c0_113] : memref<3x8x8x8xbf16, #tpu.memory_space<vmem>>, vector<1x1x8x8xbf16>
    %137 = vector.shape_cast %136 : vector<1x1x8x8xbf16> to vector<8x8xbf16>
    %138 = vector.shape_cast %135 : vector<8x8xbf16> to vector<1x1x8x8xbf16>
    tpu.vector_store %arg4[%c2_110, %c3_111, %c0_112, %c0_113], %138 {strides = array<i32>} : memref<3x8x8x8xbf16, #tpu.memory_space<vmem>>, vector<1x1x8x8xbf16>,
    %139 = vector.extract_strided_slice %114 {offsets = [64, 0], sizes = [16, 8], strides = [1, 1]} : vector<128x8xbf16> to vector<16x8xbf16>
    %cst_114 = arith.constant dense<0.000000e+00> : vector<8x8xf32>
    %140 = tpu.matmul %112, %139, %cst_114 {dimension_numbers = #tpu.dot_dimension_numbers<[1], [0], [0], [1], [0, 0, 1, 1], [], []>} : vector<8x16xbf16>, vector<16x8xbf16>, vector<8x8xf32> -> vector<8x8xf32>
    %141 = arith.truncf %140 : vector<8x8xf32> to vector<8x8xbf16>
    %c2_115 = arith.constant 2 : index
    %c4_116 = arith.constant 4 : index
    %c0_117 = arith.constant 0 : index
    %c0_118 = arith.constant 0 : index
    %142 = vector.load %arg4[%c2_115, %c4_116, %c0_117, %c0_118] : memref<3x8x8x8xbf16, #tpu.memory_space<vmem>>, vector<1x1x8x8xbf16>
    %143 = vector.shape_cast %142 : vector<1x1x8x8xbf16> to vector<8x8xbf16>
    %144 = vector.shape_cast %141 : vector<8x8xbf16> to vector<1x1x8x8xbf16>
    tpu.vector_store %arg4[%c2_115, %c4_116, %c0_117, %c0_118], %144 {strides = array<i32>} : memref<3x8x8x8xbf16, #tpu.memory_space<vmem>>, vector<1x1x8x8xbf16>,
    %145 = vector.extract_strided_slice %114 {offsets = [80, 0], sizes = [16, 8], strides = [1, 1]} : vector<128x8xbf16> to vector<16x8xbf16>
    %cst_119 = arith.constant dense<0.000000e+00> : vector<8x8xf32>
    %146 = tpu.matmul %112, %145, %cst_119 {dimension_numbers = #tpu.dot_dimension_numbers<[1], [0], [0], [1], [0, 0, 1, 1], [], []>} : vector<8x16xbf16>, vector<16x8xbf16>, vector<8x8xf32> -> vector<8x8xf32>
    %147 = arith.truncf %146 : vector<8x8xf32> to vector<8x8xbf16>
    %c2_120 = arith.constant 2 : index
    %c5_121 = arith.constant 5 : index
    %c0_122 = arith.constant 0 : index
    %c0_123 = arith.constant 0 : index
    %148 = vector.load %arg4[%c2_120, %c5_121, %c0_122, %c0_123] : memref<3x8x8x8xbf16, #tpu.memory_space<vmem>>, vector<1x1x8x8xbf16>
    %149 = vector.shape_cast %148 : vector<1x1x8x8xbf16> to vector<8x8xbf16>
    %150 = vector.shape_cast %147 : vector<8x8xbf16> to vector<1x1x8x8xbf16>
    tpu.vector_store %arg4[%c2_120, %c5_121, %c0_122, %c0_123], %150 {strides = array<i32>} : memref<3x8x8x8xbf16, #tpu.memory_space<vmem>>, vector<1x1x8x8xbf16>,
    %151 = vector.extract_strided_slice %114 {offsets = [96, 0], sizes = [16, 8], strides = [1, 1]} : vector<128x8xbf16> to vector<16x8xbf16>
    %cst_124 = arith.constant dense<0.000000e+00> : vector<8x8xf32>
    %152 = tpu.matmul %112, %151, %cst_124 {dimension_numbers = #tpu.dot_dimension_numbers<[1], [0], [0], [1], [0, 0, 1, 1], [], []>} : vector<8x16xbf16>, vector<16x8xbf16>, vector<8x8xf32> -> vector<8x8xf32>
    %153 = arith.truncf %152 : vector<8x8xf32> to vector<8x8xbf16>
    %c2_125 = arith.constant 2 : index
    %c6_126 = arith.constant 6 : index
    %c0_127 = arith.constant 0 : index
    %c0_128 = arith.constant 0 : index
    %154 = vector.load %arg4[%c2_125, %c6_126, %c0_127, %c0_128] : memref<3x8x8x8xbf16, #tpu.memory_space<vmem>>, vector<1x1x8x8xbf16>
    %155 = vector.shape_cast %154 : vector<1x1x8x8xbf16> to vector<8x8xbf16>
    %156 = vector.shape_cast %153 : vector<8x8xbf16> to vector<1x1x8x8xbf16>
    tpu.vector_store %arg4[%c2_125, %c6_126, %c0_127, %c0_128], %156 {strides = array<i32>} : memref<3x8x8x8xbf16, #tpu.memory_space<vmem>>, vector<1x1x8x8xbf16>,
    %157 = vector.extract_strided_slice %114 {offsets = [112, 0], sizes = [16, 8], strides = [1, 1]} : vector<128x8xbf16> to vector<16x8xbf16>
    %cst_129 = arith.constant dense<0.000000e+00> : vector<8x8xf32>
    %158 = tpu.matmul %112, %157, %cst_129 {dimension_numbers = #tpu.dot_dimension_numbers<[1], [0], [0], [1], [0, 0, 1, 1], [], []>} : vector<8x16xbf16>, vector<16x8xbf16>, vector<8x8xf32> -> vector<8x8xf32>
    %159 = arith.truncf %158 : vector<8x8xf32> to vector<8x8xbf16>
    %c2_130 = arith.constant 2 : index
    %c7_131 = arith.constant 7 : index
    %c0_132 = arith.constant 0 : index
    %c0_133 = arith.constant 0 : index
    %160 = vector.load %arg4[%c2_130, %c7_131, %c0_132, %c0_133] : memref<3x8x8x8xbf16, #tpu.memory_space<vmem>>, vector<1x1x8x8xbf16>
    %161 = vector.shape_cast %160 : vector<1x1x8x8xbf16> to vector<8x8xbf16>
    %162 = vector.shape_cast %159 : vector<8x8xbf16> to vector<1x1x8x8xbf16>
    tpu.vector_store %arg4[%c2_130, %c7_131, %c0_132, %c0_133], %162 {strides = array<i32>} : memref<3x8x8x8xbf16, #tpu.memory_space<vmem>>, vector<1x1x8x8xbf16>,
    return
  }
  func.func @transform_0(%arg0: i32) -> (i32, i32, i32) {
    %c0_i32 = arith.constant 0 : i32
    %c0_i32_0 = arith.constant 0 : i32
    %c0_i32_1 = arith.constant 0 : i32
    return %arg0, %c0_i32, %c0_i32_0 : i32, i32, i32
  }
  func.func @transform_1(%arg0: i32) -> (i32, i32, i32) {
    %c0_i32 = arith.constant 0 : i32
    %c0_i32_0 = arith.constant 0 : i32
    %c0_i32_1 = arith.constant 0 : i32
    return %arg0, %c0_i32, %c0_i32_0 : i32, i32, i32
  }
  func.func @transform_2(%arg0: i32) -> (i32, i32) {
    %c0_i32 = arith.constant 0 : i32
    %c0_i32_0 = arith.constant 0 : i32
    %c0_i32_1 = arith.constant 0 : i32
    return %c0_i32, %c0_i32_0 : i32, i32
  }
  func.func @transform_3(%arg0: i32) -> (i32, i32, i32, i32) {
    %c0_i32 = arith.constant 0 : i32
    %c0_i32_0 = arith.constant 0 : i32
    %c0_i32_1 = arith.constant 0 : i32
    %c0_i32_2 = arith.constant 0 : i32
    return %arg0, %c0_i32, %c0_i32_0, %c0_i32_1 : i32, i32, i32, i32
  }
}

</mosaic_0001>

<bundles_post_ra>
// kernel: tpu_custom_call.1
= control target key start
LH: loop header
LB: loop body
LE: loop exit
PB: predicated region body
PF: predicated region fallthrough
CT: control target
= control target key end

     0   :  { %vm81_vm0 = vcmask 130048   ;;  %s2130_s0 = inlined_call_operand.vmem [shape: bf16[3,8,16], index: 0, kind: input, shape index: {}]   ;;  %s2131_s1 = inlined_call_operand.vmem [shape: bf16[3,16,8], index: 1, kind: input, shape index: {}]   ;;  %s2132_s2 = inlined_call_operand.vmem [shape: bf16[128,16], index: 2, kind: input, shape index: {}]   ;;  %s2133_s3 = inlined_call_operand.hbm [shape: bf16[3,8,8,8], index: 3, kind: output, shape index: {}]  }
   0x1   :  { %v1843_v0 = vld [vmem:[%s2131_s1] sm:$0xff]   ;;  %v1912_v2 = vld [vmem:[%s2132_s2 + $0x8] sm:$0xff]   ;;  %v1919_v3 = vld [vmem:[%s2132_s2 + $0x10] sm:$0xff]  }
   0x2   :  { %v1907_v1 = vld [vmem:[%s2132_s2] sm:$0xff]   ;;  %1640 = vmatprep.subr.bf16.mxu0 %v1843_v0  ;;  %v1928_v4 = vld [vmem:[%s2132_s2 + $0x18] sm:$0xff]  }
   0x3   :  { %1641 = vmatpush3.bf16.msra.mxu0 %v1843_v0  ;;  %1642 = vmatprep.mubr.msk.bf16.mxu0 %vm81_vm0, %v1907_v1 }
   0x6   :  { %1643 = vmatmul.mubr.msk.bf16.vlgmr.msra.gmra.mxu0 %vm81_vm0, %v1912_v2 }
   0x7   :  { %1646 = vmatprep.mubr.msk.bf16.mxu0 %vm81_vm0, %v1919_v3 }
   0x8   :  { %8 = vsyncpa [#allocation3], 0  ;;  %v1933_v5 = vld [vmem:[%s2132_s2 + $0x20] sm:$0xff]   ;;  %v1942_v6 = vld [vmem:[%s2132_s2 + $0x28] sm:$0xff]   ;;  %v1876_v9 = vmov 0.0   ;;  %vm1877_vm1 = vmmov 0  }
   0x9   :  { %v1947_v7 = vld [vmem:[%s2132_s2 + $0x30] sm:$0xff]   ;;  %v1956_v8 = vld [vmem:[%s2132_s2 + $0x38] sm:$0xff]   ;;  %1658 = vmatprep.subr.bf16.mxu1 %v1876_v9  ;;  %1682 = vmatprep.subr.bf16.mxu0 %v1876_v9  ;;  %v34_v16 = vld [vmem:[%s2130_s0] sm:$0xf]  ;;  %vm255_vm2 = vcmask 60416  }
   0xa   :  { %1660 = vmatprep.mubr.msk.bf16.mxu1 %vm1877_vm1, %v1876_v9  ;;  %v1852_v32 = vld [vmem:[%s2131_s1 + $0x8] sm:$0xff]   ;;  %v1527_v52 = vld [vmem:[%s2130_s0 + $0x4] sm:$0xf] }
   0xe   :  { %1647 = vmatmul.mubr.msk.bf16.gmra.mxu0 %vm81_vm0, %v1928_v4 }
   0xf   :  { %1650 = vmatprep.mubr.msk.bf16.mxu0 %vm81_vm0, %v1933_v5 }
  0x16   :  { %1651 = vmatmul.mubr.msk.bf16.gmra.mxu0 %vm81_vm0, %v1942_v6 }
  0x17   :  { %1654 = vmatprep.mubr.msk.bf16.mxu0 %vm81_vm0, %v1947_v7 }
  0x1e   :  { %1655 = vmatmul.mubr.msk.bf16.gmra.mxu0 %vm81_vm0, %v1956_v8 }
  0x1f   :  { %1684 = vmatprep.mubr.msk.bf16.mxu0 %vm1877_vm1, %v1876_v9 }
  0xc6   :  { %v1644_v10 = vpop.f32.mrf.mxu0 }
  0xc8   :  { %v140_v11 = vpop.f32.mrf.mxu0 }
  0xca   :  { %v1645_v12 = vpop.f32.mrf.mxu0 }
  0xcb   :  { %v204_v18 = vpack.c.bf16 %v1645_v12, %v1644_v10 }
  0xcc   :  { %v143_v13 = vpop.f32.mrf.mxu0 }
  0xcd   :  { %v203_v14 = vpack.c.bf16 %v143_v13, %v140_v11  ;;  %v1853_v13 = vld [vmem:[%s2131_s1 + $0x10] sm:$0xff]  }
  0xce   :  { %v1648_v15 = vpop.f32.mrf.mxu0 }
  0xcf   :  { %1659 = vmatpush3.bf16.msra.mxu1 %v203_v14 }
  0xd0   :  { %v156_v17 = vpop.f32.mrf.mxu0  ;;  %1664 = vmatprep.subr.bf16.mxu1 %v1876_v9 }
  0xd2   :  { %v1649_v19 = vpop.f32.mrf.mxu0  ;;  %1661 = vmatmul.mubr.msk.bf16.vlgmr.msra.gmra.mxu1 %vm81_vm0, %v34_v16 }
  0xd3   :  { %1665 = vmatpush3.bf16.msra.mxu1 %v204_v18  ;;  %1666 = vmatprep.mubr.msk.bf16.mxu1 %vm1877_vm1, %v1876_v9  ;;  %v206_v29 = vpack.c.bf16 %v1649_v19, %v1648_v15 }
  0xd4   :  { %v159_v20 = vpop.f32.mrf.mxu0  ;;  %1670 = vmatprep.subr.bf16.mxu1 %v1876_v9 }
  0xd5   :  { %v205_v23 = vpack.c.bf16 %v159_v20, %v156_v17 }
  0xd6   :  { %v1652_v21 = vpop.f32.mrf.mxu0 }
  0xd8   :  { %v172_v22 = vpop.f32.mrf.mxu0 }
  0xda   :  { %v1653_v24 = vpop.f32.mrf.mxu0  ;;  %1667 = vmatmul.mubr.msk.bf16.vlgmr.msra.gmra.mxu1 %vm81_vm0, %v34_v16 }
  0xdb   :  { %1671 = vmatpush3.bf16.msra.mxu1 %v205_v23  ;;  %1672 = vmatprep.mubr.msk.bf16.mxu1 %vm1877_vm1, %v1876_v9  ;;  %v208_v34 = vpack.c.bf16 %v1653_v24, %v1652_v21 }
  0xdc   :  { %v175_v25 = vpop.f32.mrf.mxu0  ;;  %1676 = vmatprep.subr.bf16.mxu1 %v1876_v9 }
  0xdd   :  { %v207_v26 = vpack.c.bf16 %v175_v25, %v172_v22 }
  0xde   :  { %v1656_v27 = vpop.f32.mrf.mxu0 }
  0xdf   :  { %1683 = vmatpush3.bf16.msra.mxu0 %v207_v26 }
  0xe0   :  { %v188_v28 = vpop.f32.mrf.mxu0  ;;  %1694 = vmatprep.subr.bf16.mxu0 %v1876_v9 }
  0xe2   :  { %v1657_v30 = vpop.f32.mrf.mxu0  ;;  %1673 = vmatmul.mubr.msk.bf16.vlgmr.msra.gmra.mxu1 %vm81_vm0, %v34_v16  ;;  %1685 = vmatmul.mubr.msk.bf16.vlgmr.msra.gmra.mxu0 %vm81_vm0, %v34_v16 }
  0xe3   :  { %1677 = vmatpush3.bf16.msra.mxu1 %v206_v29  ;;  %1678 = vmatprep.mubr.msk.bf16.mxu1 %vm1877_vm1, %v1876_v9  ;;  %v210_v35 = vpack.c.bf16 %v1657_v30, %v1656_v27 }
  0xe4   :  { %v191_v31 = vpop.f32.mrf.mxu0  ;;  %1688 = vmatprep.subr.bf16.mxu1 %v1876_v9  ;;  %1696 = vmatprep.mubr.msk.bf16.mxu0 %vm1877_vm1, %v1876_v9 }
  0xe5   :  { %v209_v33 = vpack.c.bf16 %v191_v31, %v188_v28 }
  0xe7   :  { %1695 = vmatpush3.bf16.msra.mxu0 %v209_v33 }
  0xe8   :  { %1706 = vmatprep.subr.bf16.mxu0 %v1852_v32 }
  0xea   :  { %1679 = vmatmul.mubr.msk.bf16.vlgmr.msra.gmra.mxu1 %vm81_vm0, %v34_v16  ;;  %1697 = vmatmul.mubr.msk.bf16.vlgmr.msra.gmra.mxu0 %vm81_vm0, %v34_v16 }
  0xeb   :  { %1689 = vmatpush3.bf16.msra.mxu1 %v208_v34  ;;  %1707 = vmatpush3.bf16.msra.mxu0 %v1852_v32 }
  0xec   :  { %1690 = vmatprep.mubr.msk.bf16.mxu1 %vm1877_vm1, %v1876_v9  ;;  %1700 = vmatprep.subr.bf16.mxu1 %v1876_v9 }
  0xed   :  { %1708 = vmatprep.mubr.msk.bf16.mxu0 %vm81_vm0, %v1907_v1  ;;  %1748 = vmatprep.subr.bf16.mxu0 %v1876_v9 }
  0xf2   :  { %1691 = vmatmul.mubr.msk.bf16.vlgmr.msra.gmra.mxu1 %vm81_vm0, %v34_v16  ;;  %1709 = vmatmul.mubr.msk.bf16.vlgmr.msra.gmra.mxu0 %vm81_vm0, %v1912_v2 }
  0xf3   :  { %1701 = vmatpush3.bf16.msra.mxu1 %v210_v35  ;;  %1712 = vmatprep.mubr.msk.bf16.mxu0 %vm81_vm0, %v1919_v3 }
  0xf4   :  { %1702 = vmatprep.mubr.msk.bf16.mxu1 %vm1877_vm1, %v1876_v9  ;;  %1724 = vmatprep.subr.bf16.mxu1 %v1876_v9 }
  0xfa   :  { %1713 = vmatmul.mubr.msk.bf16.gmra.mxu0 %vm81_vm0, %v1928_v4  ;;  %1703 = vmatmul.mubr.msk.bf16.vlgmr.msra.gmra.mxu1 %vm81_vm0, %v34_v16 }
  0xfb   :  { %1716 = vmatprep.mubr.msk.bf16.mxu0 %vm81_vm0, %v1933_v5  ;;  %1726 = vmatprep.mubr.msk.bf16.mxu1 %vm1877_vm1, %v1876_v9 }
 0x102   :  { %1717 = vmatmul.mubr.msk.bf16.gmra.mxu0 %vm81_vm0, %v1942_v6 }
 0x103   :  { %1720 = vmatprep.mubr.msk.bf16.mxu0 %vm81_vm0, %v1947_v7 }
 0x10a   :  { %1721 = vmatmul.mubr.msk.bf16.gmra.mxu0 %vm81_vm0, %v1956_v8 }
 0x10b   :  { %1750 = vmatprep.mubr.msk.bf16.mxu0 %vm1877_vm1, %v1876_v9 }
 0x1a2   :  { %v420_v36 = vpop.f32.mrf.mxu0 }
 0x1a3   :  { %v426_v37 = vpack.c.bf16 %v420_v36, %v420_v36 }
 0x1a4   :  { %v1686_v38 = vpop.f32.mrf.mxu0 }
 0x1a5   :  { %428 = vst.msk [vmem:[#allocation2 + $0x10] sm:$0xf] %vm255_vm2, %v426_v37 }
 0x1a6   :  { %v423_v39 = vpop.f32.mrf.mxu0 }
 0x1a8   :  { %v1687_v40 = vpop.f32.mrf.mxu0 }
 0x1aa   :  { %v506_v41 = vpop.f32.mrf.mxu0 }
 0x1ab   :  { %v512_v42 = vpack.c.bf16 %v506_v41, %v506_v41 }
 0x1ac   :  { %v1698_v43 = vpop.f32.mrf.mxu0 }
 0x1ad   :  { %514 = vst.msk [vmem:[#allocation2 + $0x18] sm:$0xf] %vm255_vm2, %v512_v42 }
 0x1ae   :  { %v509_v44 = vpop.f32.mrf.mxu0 }
 0x1b0   :  { %v1699_v45 = vpop.f32.mrf.mxu0 }
 0x1b2   :  { %v1710_v46 = vpop.f32.mrf.mxu0 }
 0x1b4   :  { %v603_v47 = vpop.f32.mrf.mxu0 }
 0x1b6   :  { %v1711_v48 = vpop.f32.mrf.mxu0 }
 0x1b7   :  { %v667_v54 = vpack.c.bf16 %v1711_v48, %v1710_v46 }
 0x1b8   :  { %v606_v49 = vpop.f32.mrf.mxu0 }
 0x1b9   :  { %v666_v50 = vpack.c.bf16 %v606_v49, %v603_v47 }
 0x1ba   :  { %v1714_v51 = vpop.f32.mrf.mxu0 }
 0x1bb   :  { %1725 = vmatpush3.bf16.msra.mxu1 %v666_v50 }
 0x1bc   :  { %v619_v53 = vpop.f32.mrf.mxu0  ;;  %1730 = vmatprep.subr.bf16.mxu1 %v1876_v9 }
 0x1be   :  { %v1715_v55 = vpop.f32.mrf.mxu0  ;;  %1727 = vmatmul.mubr.msk.bf16.vlgmr.msra.gmra.mxu1 %vm81_vm0, %v1527_v52 }
 0x1bf   :  { %1731 = vmatpush3.bf16.msra.mxu1 %v667_v54  ;;  %1732 = vmatprep.mubr.msk.bf16.mxu1 %vm1877_vm1, %v1876_v9  ;;  %v669_v10 = vpack.c.bf16 %v1715_v55, %v1714_v51 }
 0x1c0   :  { %v622_v56 = vpop.f32.mrf.mxu0  ;;  %1736 = vmatprep.subr.bf16.mxu1 %v1876_v9 }
 0x1c1   :  { %v668_v59 = vpack.c.bf16 %v622_v56, %v619_v53 }
 0x1c2   :  { %v1718_v57 = vpop.f32.mrf.mxu0 }
 0x1c4   :  { %v635_v58 = vpop.f32.mrf.mxu0 }
 0x1c6   :  { %v1719_v60 = vpop.f32.mrf.mxu0  ;;  %1733 = vmatmul.mubr.msk.bf16.vlgmr.msra.gmra.mxu1 %vm81_vm0, %v1527_v52 }
 0x1c7   :  { %1737 = vmatpush3.bf16.msra.mxu1 %v668_v59  ;;  %1738 = vmatprep.mubr.msk.bf16.mxu1 %vm1877_vm1, %v1876_v9  ;;  %v671_v15 = vpack.c.bf16 %v1719_v60, %v1718_v57 }
 0x1c8   :  { %v638_v61 = vpop.f32.mrf.mxu0  ;;  %1742 = vmatprep.subr.bf16.mxu1 %v1876_v9 }
 0x1c9   :  { %v670_v62 = vpack.c.bf16 %v638_v61, %v635_v58 }
 0x1ca   :  { %v1722_v63 = vpop.f32.mrf.mxu0 }
 0x1cb   :  { %1749 = vmatpush3.bf16.msra.mxu0 %v670_v62 }
 0x1cc   :  { %v651_v0 = vpop.f32.mrf.mxu0  ;;  %1760 = vmatprep.subr.bf16.mxu0 %v1876_v9 }
 0x1ce   :  { %v1723_v11 = vpop.f32.mrf.mxu0  ;;  %1739 = vmatmul.mubr.msk.bf16.vlgmr.msra.gmra.mxu1 %vm81_vm0, %v1527_v52  ;;  %1751 = vmatmul.mubr.msk.bf16.vlgmr.msra.gmra.mxu0 %vm81_vm0, %v1527_v52 }
 0x1cf   :  { %1743 = vmatpush3.bf16.msra.mxu1 %v669_v10  ;;  %1744 = vmatprep.mubr.msk.bf16.mxu1 %vm1877_vm1, %v1876_v9  ;;  %v673_v16 = vpack.c.bf16 %v1723_v11, %v1722_v63 }
 0x1d0   :  { %v654_v12 = vpop.f32.mrf.mxu0  ;;  %1754 = vmatprep.subr.bf16.mxu1 %v1876_v9  ;;  %1762 = vmatprep.mubr.msk.bf16.mxu0 %vm1877_vm1, %v1876_v9 }
 0x1d1   :  { %v672_v14 = vpack.c.bf16 %v654_v12, %v651_v0 }
 0x1d3   :  { %1761 = vmatpush3.bf16.msra.mxu0 %v672_v14 }
 0x1d4   :  { %1772 = vmatprep.subr.bf16.mxu0 %v1853_v13 }
 0x1d6   :  { %1745 = vmatmul.mubr.msk.bf16.vlgmr.msra.gmra.mxu1 %vm81_vm0, %v1527_v52  ;;  %1763 = vmatmul.mubr.msk.bf16.vlgmr.msra.gmra.mxu0 %vm81_vm0, %v1527_v52 }
 0x1d7   :  { %1755 = vmatpush3.bf16.msra.mxu1 %v671_v15  ;;  %1773 = vmatpush3.bf16.msra.mxu0 %v1853_v13 }
 0x1d8   :  { %1756 = vmatprep.mubr.msk.bf16.mxu1 %vm1877_vm1, %v1876_v9  ;;  %1766 = vmatprep.subr.bf16.mxu1 %v1876_v9 }
 0x1d9   :  { %1774 = vmatprep.mubr.msk.bf16.mxu0 %vm81_vm0, %v1907_v1  ;;  %1814 = vmatprep.subr.bf16.mxu0 %v1876_v9  ;;  %v248_v1 = vpop.f32.mrf.mxu1 }
 0x1de   :  { %1757 = vmatmul.mubr.msk.bf16.vlgmr.msra.gmra.mxu1 %vm81_vm0, %v1527_v52  ;;  %1775 = vmatmul.mubr.msk.bf16.vlgmr.msra.gmra.mxu0 %vm81_vm0, %v1912_v2  ;;  %v254_v2 = vpack.c.bf16 %v248_v1, %v248_v1 }
 0x1df   :  { %1767 = vmatpush3.bf16.msra.mxu1 %v673_v16  ;;  %1778 = vmatprep.mubr.msk.bf16.mxu0 %vm81_vm0, %v1919_v3  ;;  %v1662_v3 = vpop.f32.mrf.mxu1 }
 0x1e0   :  { %1768 = vmatprep.mubr.msk.bf16.mxu1 %vm1877_vm1, %v1876_v9  ;;  %1790 = vmatprep.subr.bf16.mxu1 %v1876_v9  ;;  %256 = vst.msk [vmem:[#allocation2] sm:$0xf] %vm255_vm2, %v254_v2 }
 0x1e6   :  { %1779 = vmatmul.mubr.msk.bf16.gmra.mxu0 %vm81_vm0, %v1928_v4  ;;  %1769 = vmatmul.mubr.msk.bf16.vlgmr.msra.gmra.mxu1 %vm81_vm0, %v1527_v52  ;;  %v251_v4 = vpop.f32.mrf.mxu1 }
 0x1e7   :  { %1782 = vmatprep.mubr.msk.bf16.mxu0 %vm81_vm0, %v1933_v5  ;;  %1792 = vmatprep.mubr.msk.bf16.mxu1 %vm1877_vm1, %v1876_v9 }
 0x1e8   :  { %v1663_v5 = vpop.f32.mrf.mxu1 }
 0x1ea   :  { %v291_v17 = vpop.f32.mrf.mxu1 }
 0x1eb   :  { %v297_v18 = vpack.c.bf16 %v291_v17, %v291_v17 }
 0x1ec   :  { %v1668_v19 = vpop.f32.mrf.mxu1 }
 0x1ed   :  { %299 = vst.msk [vmem:[#allocation2 + $0x4] sm:$0xf] %vm255_vm2, %v297_v18  ;;  %v1547_v19 = vld [vmem:[%s2130_s0 + $0x8] sm:$0xf]  ;;  %s1878_s0 = smov [#allocation2]  }
 0x1ee   :  { %1783 = vmatmul.mubr.msk.bf16.gmra.mxu0 %vm81_vm0, %v1942_v6  ;;  %v294_v6 = vpop.f32.mrf.mxu1  ;;  %s1489_s11 = sshll.u32 %s1878_s0, 4  ;;  %s1490_s11 = int_to_ptr.vmem [resolvable:$true] %s1489_s11 }
 0x1ef   :  { %1786 = vmatprep.mubr.msk.bf16.mxu0 %vm81_vm0, %v1947_v7  ;;  %s1854_s12 = scalar_lea.vmem %s1490_s11, 1536  ;;  %p1859_p1 = scmp.lt.s32.totalorder %s1490_s11, %s1490_s11 }
 0x1f0   :  { %v1669_v7 = vpop.f32.mrf.mxu1  ;;  %p1855_p0 = scmp.ne.s32.totalorder %s1490_s11, %s1854_s12  ;;  %p1860_p2 = scmp.lt.s32.totalorder %s1854_s12, %s1854_s12 }
 0x1f2   :  { %v334_v20 = vpop.f32.mrf.mxu1  ;;  %p1861_p3 = por %p1860_p2, %p1859_p1 }
 0x1f3   :  { %v340_v21 = vpack.c.bf16 %v334_v20, %v334_v20 }
 0x1f4   :  { %p1862_p4 = pnand %p1861_p3, %p1855_p0 }
 0x1f5   :  { %342 = vst.msk [vmem:[#allocation2 + $0x8] sm:$0xf] %vm255_vm2, %v340_v21 }
 0x1f6   :  { %1787 = vmatmul.mubr.msk.bf16.gmra.mxu0 %vm81_vm0, %v1956_v8  ;;  %v1674_v8 = vpop.f32.mrf.mxu1 }
 0x1f7   :  { %1816 = vmatprep.mubr.msk.bf16.mxu0 %vm1877_vm1, %v1876_v9 }
 0x1f8   :  { %v337_v22 = vpop.f32.mrf.mxu1 }
 0x1fa   :  { %v1675_v23 = vpop.f32.mrf.mxu1 }
 0x1fc   :  { %v377_v24 = vpop.f32.mrf.mxu1 }
 0x1fd   :  { %v383_v25 = vpack.c.bf16 %v377_v24, %v377_v24 }
 0x1fe   :  { %v1680_v26 = vpop.f32.mrf.mxu1 }
 0x1ff   :  { %385 = vst.msk [vmem:[#allocation2 + $0xc] sm:$0xf] %vm255_vm2, %v383_v25 }
 0x200   :  { %v380_v27 = vpop.f32.mrf.mxu1 }
 0x202   :  { %v1681_v28 = vpop.f32.mrf.mxu1 }
 0x204   :  { %v463_v29 = vpop.f32.mrf.mxu1 }
 0x205   :  { %v469_v30 = vpack.c.bf16 %v463_v29, %v463_v29 }
 0x206   :  { %v1692_v31 = vpop.f32.mrf.mxu1 }
 0x207   :  { %471 = vst.msk [vmem:[#allocation2 + $0x14] sm:$0xf] %vm255_vm2, %v469_v30 }
 0x208   :  { %v466_v32 = vpop.f32.mrf.mxu1 }
 0x20a   :  { %v1693_v33 = vpop.f32.mrf.mxu1 }
 0x20c   :  { %v549_v34 = vpop.f32.mrf.mxu1 }
 0x20d   :  { %v555_v35 = vpack.c.bf16 %v549_v34, %v549_v34 }
 0x20e   :  { %v1704_v36 = vpop.f32.mrf.mxu1 }
 0x20f   :  { %557 = vst.msk [vmem:[#allocation2 + $0x1c] sm:$0xf] %vm255_vm2, %v555_v35 }
 0x210   :  { %v552_v37 = vpop.f32.mrf.mxu1 }
 0x212   :  { %v1705_v38 = vpop.f32.mrf.mxu1 }
 0x27e   :  { %v711_v39 = vpop.f32.mrf.mxu1 }
 0x27f   :  { %v717_v40 = vpack.c.bf16 %v711_v39, %v711_v39 }
 0x280   :  { %v1728_v41 = vpop.f32.mrf.mxu1 }
 0x281   :  { %719 = vst.msk [vmem:[#allocation2 + $0x20] sm:$0xf] %vm255_vm2, %v717_v40 }
 0x282   :  { %v714_v42 = vpop.f32.mrf.mxu1 }
 0x284   :  { %v1729_v43 = vpop.f32.mrf.mxu1 }
 0x286   :  { %v754_v44 = vpop.f32.mrf.mxu1 }
 0x287   :  { %v760_v45 = vpack.c.bf16 %v754_v44, %v754_v44 }
 0x288   :  { %v1734_v46 = vpop.f32.mrf.mxu1 }
 0x289   :  { %762 = vst.msk [vmem:[#allocation2 + $0x24] sm:$0xf] %vm255_vm2, %v760_v45 }
 0x28a   :  { %v757_v48 = vpop.f32.mrf.mxu1 }
 0x28c   :  { %v1735_v51 = vpop.f32.mrf.mxu1 }
 0x28e   :  { %v883_v47 = vpop.f32.mrf.mxu0  ;;  %v797_v53 = vpop.f32.mrf.mxu1 }
 0x28f   :  { %v889_v49 = vpack.c.bf16 %v883_v47, %v883_v47  ;;  %v803_v54 = vpack.c.bf16 %v797_v53, %v797_v53 }
 0x290   :  { %v1752_v50 = vpop.f32.mrf.mxu0  ;;  %v1740_v56 = vpop.f32.mrf.mxu1 }
 0x291   :  { %891 = vst.msk [vmem:[#allocation2 + $0x30] sm:$0xf] %vm255_vm2, %v889_v49  ;;  %805 = vst.msk [vmem:[#allocation2 + $0x28] sm:$0xf] %vm255_vm2, %v803_v54 }
 0x292   :  { %v886_v52 = vpop.f32.mrf.mxu0  ;;  %v800_v58 = vpop.f32.mrf.mxu1 }
 0x294   :  { %v1753_v55 = vpop.f32.mrf.mxu0  ;;  %v1741_v61 = vpop.f32.mrf.mxu1 }
 0x296   :  { %v969_v57 = vpop.f32.mrf.mxu0  ;;  %v840_v63 = vpop.f32.mrf.mxu1 }
 0x297   :  { %v975_v59 = vpack.c.bf16 %v969_v57, %v969_v57  ;;  %v846_v0 = vpack.c.bf16 %v840_v63, %v840_v63 }
 0x298   :  { %v1764_v60 = vpop.f32.mrf.mxu0  ;;  %v1746_v11 = vpop.f32.mrf.mxu1 }
 0x299   :  { %977 = vst.msk [vmem:[#allocation2 + $0x38] sm:$0xf] %vm255_vm2, %v975_v59  ;;  %848 = vst.msk [vmem:[#allocation2 + $0x2c] sm:$0xf] %vm255_vm2, %v846_v0 }
 0x29a   :  { %v972_v62 = vpop.f32.mrf.mxu0  ;;  %v843_v13 = vpop.f32.mrf.mxu1 }
 0x29c   :  { %v1765_v10 = vpop.f32.mrf.mxu0  ;;  %v1747_v15 = vpop.f32.mrf.mxu1 }
 0x29e   :  { %v1776_v12 = vpop.f32.mrf.mxu0  ;;  %v926_v1 = vpop.f32.mrf.mxu1 }
 0x29f   :  { %v932_v2 = vpack.c.bf16 %v926_v1, %v926_v1 }
 0x2a0   :  { %v1066_v14 = vpop.f32.mrf.mxu0  ;;  %v1758_v4 = vpop.f32.mrf.mxu1 }
 0x2a1   :  { %934 = vst.msk [vmem:[#allocation2 + $0x34] sm:$0xf] %vm255_vm2, %v932_v2 }
 0x2a2   :  { %v1777_v16 = vpop.f32.mrf.mxu0  ;;  %v929_v18 = vpop.f32.mrf.mxu1 }
 0x2a3   :  { %v1130_v20 = vpack.c.bf16 %v1777_v16, %v1776_v12 }
 0x2a4   :  { %v1069_v3 = vpop.f32.mrf.mxu0  ;;  %v1759_v7 = vpop.f32.mrf.mxu1 }
 0x2a5   :  { %v1129_v5 = vpack.c.bf16 %v1069_v3, %v1066_v14 }
 0x2a6   :  { %v1780_v17 = vpop.f32.mrf.mxu0  ;;  %v1012_v8 = vpop.f32.mrf.mxu1 }
 0x2a7   :  { %1791 = vmatpush3.bf16.msra.mxu1 %v1129_v5  ;;  %v1018_v22 = vpack.c.bf16 %v1012_v8, %v1012_v8 }
 0x2a8   :  { %1796 = vmatprep.subr.bf16.mxu1 %v1876_v9  ;;  %v1082_v6 = vpop.f32.mrf.mxu0  ;;  %v1770_v24 = vpop.f32.mrf.mxu1 }
 0x2a9   :  { %1020 = vst.msk [vmem:[#allocation2 + $0x3c] sm:$0xf] %vm255_vm2, %v1018_v22 }
 0x2aa   :  { %1793 = vmatmul.mubr.msk.bf16.vlgmr.msra.gmra.mxu1 %vm81_vm0, %v1547_v19  ;;  %v1781_v21 = vpop.f32.mrf.mxu0  ;;  %v1015_v26 = vpop.f32.mrf.mxu1 }
 0x2ab   :  { %1797 = vmatpush3.bf16.msra.mxu1 %v1130_v20  ;;  %1798 = vmatprep.mubr.msk.bf16.mxu1 %vm1877_vm1, %v1876_v9  ;;  %v1132_v35 = vpack.c.bf16 %v1781_v21, %v1780_v17 }
 0x2ac   :  { %v1085_v23 = vpop.f32.mrf.mxu0  ;;  %1802 = vmatprep.subr.bf16.mxu1 %v1876_v9  ;;  %v1771_v29 = vpop.f32.mrf.mxu1 }
 0x2ad   :  { %v1131_v27 = vpack.c.bf16 %v1085_v23, %v1082_v6 }
 0x2ae   :  { %v1784_v25 = vpop.f32.mrf.mxu0 }
 0x2b0   :  { %v1098_v28 = vpop.f32.mrf.mxu0 }
 0x2b2   :  { %1799 = vmatmul.mubr.msk.bf16.vlgmr.msra.gmra.mxu1 %vm81_vm0, %v1547_v19  ;;  %v1785_v30 = vpop.f32.mrf.mxu0 }
 0x2b3   :  { %1803 = vmatpush3.bf16.msra.mxu1 %v1131_v27  ;;  %1804 = vmatprep.mubr.msk.bf16.mxu1 %vm1877_vm1, %v1876_v9  ;;  %v1134_v39 = vpack.c.bf16 %v1785_v30, %v1784_v25 }
 0x2b4   :  { %1808 = vmatprep.subr.bf16.mxu1 %v1876_v9  ;;  %v1101_v31 = vpop.f32.mrf.mxu0 }
 0x2b5   :  { %v1133_v32 = vpack.c.bf16 %v1101_v31, %v1098_v28 }
 0x2b6   :  { %v1788_v33 = vpop.f32.mrf.mxu0 }
 0x2b7   :  { %1815 = vmatpush3.bf16.msra.mxu0 %v1133_v32 }
 0x2b8   :  { %v1114_v34 = vpop.f32.mrf.mxu0  ;;  %1826 = vmatprep.subr.bf16.mxu0 %v1876_v9 }
 0x2ba   :  { %1805 = vmatmul.mubr.msk.bf16.vlgmr.msra.gmra.mxu1 %vm81_vm0, %v1547_v19  ;;  %v1789_v36 = vpop.f32.mrf.mxu0  ;;  %1817 = vmatmul.mubr.msk.bf16.vlgmr.msra.gmra.mxu0 %vm81_vm0, %v1547_v19 }
 0x2bb   :  { %1809 = vmatpush3.bf16.msra.mxu1 %v1132_v35  ;;  %1810 = vmatprep.mubr.msk.bf16.mxu1 %vm1877_vm1, %v1876_v9  ;;  %v1136_v40 = vpack.c.bf16 %v1789_v36, %v1788_v33 }
 0x2bc   :  { %1820 = vmatprep.subr.bf16.mxu1 %v1876_v9  ;;  %v1117_v37 = vpop.f32.mrf.mxu0  ;;  %1828 = vmatprep.mubr.msk.bf16.mxu0 %vm1877_vm1, %v1876_v9 }
 0x2bd   :  { %v1135_v38 = vpack.c.bf16 %v1117_v37, %v1114_v34 }
 0x2bf   :  { %1827 = vmatpush3.bf16.msra.mxu0 %v1135_v38 }
 0x2c2   :  { %1811 = vmatmul.mubr.msk.bf16.vlgmr.msra.gmra.mxu1 %vm81_vm0, %v1547_v19  ;;  %1829 = vmatmul.mubr.msk.bf16.vlgmr.msra.gmra.mxu0 %vm81_vm0, %v1547_v19 }
 0x2c3   :  { %1821 = vmatpush3.bf16.msra.mxu1 %v1134_v39  ;;  %1822 = vmatprep.mubr.msk.bf16.mxu1 %vm1877_vm1, %v1876_v9 }
 0x2c4   :  { %1832 = vmatprep.subr.bf16.mxu1 %v1876_v9 }
 0x2ca   :  { %1823 = vmatmul.mubr.msk.bf16.vlgmr.msra.gmra.mxu1 %vm81_vm0, %v1547_v19 }
 0x2cb   :  { %1833 = vmatpush3.bf16.msra.mxu1 %v1136_v40  ;;  %1834 = vmatprep.mubr.msk.bf16.mxu1 %vm1877_vm1, %v1876_v9 }
 0x2d2   :  { %1835 = vmatmul.mubr.msk.bf16.vlgmr.msra.gmra.mxu1 %vm81_vm0, %v1547_v19 }
 0x36a   :  { %v1174_v41 = vpop.f32.mrf.mxu1 }
 0x36b   :  { %v1180_v42 = vpack.c.bf16 %v1174_v41, %v1174_v41 }
 0x36c   :  { %v1794_v43 = vpop.f32.mrf.mxu1 }
 0x36d   :  { %1182 = vst.msk [vmem:[#allocation2 + $0x40] sm:$0xf] %vm255_vm2, %v1180_v42 }
 0x36e   :  { %v1177_v44 = vpop.f32.mrf.mxu1 }
 0x370   :  { %v1795_v45 = vpop.f32.mrf.mxu1 }
 0x372   :  { %v1217_v46 = vpop.f32.mrf.mxu1 }
 0x373   :  { %v1223_v47 = vpack.c.bf16 %v1217_v46, %v1217_v46 }
 0x374   :  { %v1800_v48 = vpop.f32.mrf.mxu1 }
 0x375   :  { %1225 = vst.msk [vmem:[#allocation2 + $0x44] sm:$0xf] %vm255_vm2, %v1223_v47 }
 0x376   :  { %v1220_v49 = vpop.f32.mrf.mxu1 }
 0x378   :  { %v1801_v50 = vpop.f32.mrf.mxu1 }
 0x37a   :  { %v1260_v51 = vpop.f32.mrf.mxu1  ;;  %v1346_v52 = vpop.f32.mrf.mxu0 }
 0x37b   :  { %v1266_v53 = vpack.c.bf16 %v1260_v51, %v1260_v51  ;;  %v1352_v9 = vpack.c.bf16 %v1346_v52, %v1346_v52 }
 0x37c   :  { %v1806_v54 = vpop.f32.mrf.mxu1  ;;  %v1818_v55 = vpop.f32.mrf.mxu0 }
 0x37d   :  { %1268 = vst.msk [vmem:[#allocation2 + $0x48] sm:$0xf] %vm255_vm2, %v1266_v53  ;;  %1354 = vst.msk [vmem:[#allocation2 + $0x50] sm:$0xf] %vm255_vm2, %v1352_v9 }
 0x37e   :  { %v1263_v56 = vpop.f32.mrf.mxu1  ;;  %v1349_v57 = vpop.f32.mrf.mxu0 }
 0x380   :  { %v1807_v58 = vpop.f32.mrf.mxu1  ;;  %v1819_v59 = vpop.f32.mrf.mxu0 }
 0x382   :  { %v1303_v60 = vpop.f32.mrf.mxu1  ;;  %v1432_v61 = vpop.f32.mrf.mxu0 }
 0x383   :  { %v1309_v62 = vpack.c.bf16 %v1303_v60, %v1303_v60  ;;  %v1438_v63 = vpack.c.bf16 %v1432_v61, %v1432_v61 }
 0x384   :  { %v1812_v0 = vpop.f32.mrf.mxu1  ;;  %v1830_v10 = vpop.f32.mrf.mxu0 }
 0x385   :  { %1311 = vst.msk [vmem:[#allocation2 + $0x4c] sm:$0xf] %vm255_vm2, %v1309_v62  ;;  %1440 = vst.msk [vmem:[#allocation2 + $0x58] sm:$0xf] %vm255_vm2, %v1438_v63 }
 0x386   :  { %v1306_v11 = vpop.f32.mrf.mxu1  ;;  %v1435_v12 = vpop.f32.mrf.mxu0 }
 0x388   :  { %v1813_v13 = vpop.f32.mrf.mxu1  ;;  %v1831_v14 = vpop.f32.mrf.mxu0 }
 0x38a   :  { %v1389_v15 = vpop.f32.mrf.mxu1 }
 0x38b   :  { %v1395_v16 = vpack.c.bf16 %v1389_v15, %v1389_v15 }
 0x38c   :  { %v1824_v1 = vpop.f32.mrf.mxu1 }
 0x38d   :  { %1397 = vst.msk [vmem:[#allocation2 + $0x54] sm:$0xf] %vm255_vm2, %v1395_v16 }
 0x38e   :  { %v1392_v2 = vpop.f32.mrf.mxu1 }
 0x390   :  { %v1825_v3 = vpop.f32.mrf.mxu1 }
 0x392   :  { %v1475_v4 = vpop.f32.mrf.mxu1 }
 0x393   :  { %v1481_v5 = vpack.c.bf16 %v1475_v4, %v1475_v4 }
 0x394   :  { %v1836_v17 = vpop.f32.mrf.mxu1 }
 0x395   :  { %1483 = vst.msk [vmem:[#allocation2 + $0x5c] sm:$0xf] %vm255_vm2, %v1481_v5 }
 0x396   :  { %v1478_v18 = vpop.f32.mrf.mxu1 }
 0x397   :  { %1865 = shalt.err (!%p1862_p4)
}
 0x398   :  { %s1879_s13 = smov 64   ;;  %s1880_s14 = smov 4   ;;  %v1837_v19 = vpop.f32.mrf.mxu1 }
 0x399   :  { %1495 = dma.vmem_to_hbm [thread:$0]  %s1490_s11, 1536, %s2133_s3, [#allocation3], %s1879_s13, %s1879_s13, %s1880_s14  }
 0x39a   :  { %1874 = dma.done.wait [#allocation3], 1536  }
 0x39b   :  { %1875 = vsyncadd [#allocation3], 4294965760 }
 0x39c   :  { %1499 = vsyncpa [#allocation3], 1 }

</bundles_post_ra>
